<compile_context>
chip_gen: v7x
topology: tpu7x:2x2x1
jax: 0.10.0
libtpu: 0.0.40
codegen_flags: <defaults>
</compile_context>

<pallas_src>
import jax
import jax.numpy as jnp
from jax.experimental import pallas as pl
from jax.experimental.pallas import tpu as pltpu


def _round_up(x, m):
    return (x + m - 1) // m * m


def rnn_cell_kernel(x_ref, h_ref, w1_ref, w2_ref, b_ref, o_ref):
    # Two MXU dots into a single f32 accumulator (K splits across x / hidden),
    # f32 bias + ReLU epilogue, cast only at the final (lane-dense) store.
    z = jnp.dot(x_ref[...], w1_ref[...], preferred_element_type=jnp.float32)
    z = z + jnp.dot(h_ref[...], w2_ref[...], preferred_element_type=jnp.float32)
    z = z + b_ref[...]
    o_ref[...] = jnp.maximum(z, 0.0).astype(o_ref.dtype)


def pack_rnn_cell_params(w1, b1, w2, b2, *, compute_dtype=jnp.bfloat16, n_align=256):
    """Pack PyTorch-Linear-layout params ONCE (hoist outside any time loop).

    w1: (hid, in), b1: (hid,), w2: (hid, hid), b2: (hid,)
    Returns (w1_p, w2_p, b_p):
      w1_p: (in_dim, N_pad) = zero-padded W1^T in compute_dtype
      w2_p: (N_pad,  N_pad) = zero-padded W2^T in compute_dtype
      b_p : (1, N_pad)      = zero-padded (b1 + b2), ALWAYS float32
    N_pad is a multiple of n_align (256 = v6e/v7x MXU tile width).
    """
    hid_dim, in_dim = w1.shape
    n_pad = _round_up(hid_dim, n_align)

    w1_p = jnp.zeros((in_dim, n_pad), compute_dtype)
    w1_p = w1_p.at[:, :hid_dim].set(w1.T.astype(compute_dtype))
    w2_p = jnp.zeros((n_pad, n_pad), compute_dtype)
    w2_p = w2_p.at[:hid_dim, :hid_dim].set(w2.T.astype(compute_dtype))
    b_p = jnp.zeros((1, n_pad), jnp.float32)
    b_p = b_p.at[0, :hid_dim].set(b1.astype(jnp.float32) + b2.astype(jnp.float32))
    return w1_p, w2_p, b_p


def pad_hidden(hidden, n_pad, compute_dtype=jnp.bfloat16):
    """Lift an unpadded (B, hid) hidden state into the padded recurrent layout
    (B, N_pad). Do this ONCE per sequence, not per step."""
    B, hid_dim = hidden.shape
    h_p = jnp.zeros((B, n_pad), compute_dtype)
    return h_p.at[:, :hid_dim].set(hidden.astype(compute_dtype))


def unpad_hidden(hidden_padded, hid_dim):
    """Inverse of pad_hidden; do this ONCE at the sequence boundary."""
    return hidden_padded[:, :hid_dim]


def rnn_cell_forward_packed(x, hidden_padded, packed_params, *,
                            block_b=512, block_n=None, out_dtype=None):
    """One RNN-cell step on pre-packed params and a padded hidden state.

    x:             (B, in_dim)   any float dtype (cast to packed compute dtype)
    hidden_padded: (B, N_pad)    padded hidden (see pad_hidden); padded columns
                                 are zero and stay zero.
    Returns the new hidden state in the SAME padded (B, N_pad) layout so it can
    be fed straight back in (no per-step slice / re-pad HBM traffic).
    """
    w1_p, w2_p, b_p = packed_params
    B, in_dim = x.shape
    n_pad = w2_p.shape[1]
    compute_dtype = w1_p.dtype
    if out_dtype is None:
        out_dtype = hidden_padded.dtype

    x = x.astype(compute_dtype)
    hidden_padded = hidden_padded.astype(compute_dtype)

    c_size = jnp.dtype(compute_dtype).itemsize
    o_size = jnp.dtype(out_dtype).itemsize

    # Batch tile: full-extent block for small B (always layout-legal), else a
    # large tile (default 512 rows) -> >=2 grid steps for v7x megacore sharding
    # and amortized per-step overhead. bf16 sublane packing wants x16 rows.
    act_sub = 16 if c_size == 2 else 8
    tb = B if B <= block_b else _round_up(block_b, act_sub)
    grid_b = pl.cdiv(B, tb)

    # N tile: keep the whole weight slab resident unless it would threaten the
    # tightest VMEM budget (v7x: 64 MiB); then tile N to bound per-step VMEM.
    if block_n is None:
        weight_bytes = (in_dim + n_pad) * n_pad * c_size
        block_n = n_pad if weight_bytes <= (20 << 20) else 2048
    tn = min(_round_up(block_n, 128), n_pad)
    grid_n = pl.cdiv(n_pad, tn)

    # Weights/bias have a constant index_map iff N is not tiled; then a single
    # buffer suffices (double-buffering a resident block is pure VMEM waste).
    single_buffer_weights = grid_n == 1

    # VMEM budget (upper bound: assumes double-buffered everything) + headroom.
    vmem_needed = (2 * tb * in_dim * c_size                 # x tiles
                   + 2 * tb * n_pad * c_size                # hidden tiles
                   + 2 * (in_dim + n_pad) * tn * c_size     # weight tiles
                   + 2 * tn * 4                             # bias tiles (f32)
                   + 2 * tb * tn * o_size)                  # output tiles
    vmem_limit = int(min(128 << 20, max(vmem_needed + (4 << 20), 32 << 20)))

    def build_call(resident_kwargs):
        grid_spec = pltpu.PrefetchScalarGridSpec(
            num_scalar_prefetch=0,
            grid=(grid_b, grid_n),
            in_specs=[
                pl.BlockSpec((tb, in_dim), lambda i, j: (i, 0)),   # x: streamed over B
                pl.BlockSpec((tb, n_pad), lambda i, j: (i, 0)),    # hidden: streamed over B
                pl.BlockSpec((in_dim, tn), lambda i, j: (0, j), **resident_kwargs),
                pl.BlockSpec((n_pad, tn), lambda i, j: (0, j), **resident_kwargs),
                pl.BlockSpec((1, tn), lambda i, j: (0, j), **resident_kwargs),
            ],
            out_specs=pl.BlockSpec((tb, tn), lambda i, j: (i, j)),
        )
        return pl.pallas_call(
            rnn_cell_kernel,
            out_shape=jax.ShapeDtypeStruct((B, n_pad), out_dtype),
            grid_spec=grid_spec,
            compiler_params=pltpu.CompilerParams(
                dimension_semantics=("parallel", "parallel"),
                vmem_limit_bytes=vmem_limit,
            ),
        )

    args = (x, hidden_padded, w1_p, w2_p, b_p)
    if single_buffer_weights:
        try:
            return build_call({"pipeline_mode": pl.Buffered(1)})(*args)
        except Exception:
            # pipeline_mode=Buffered(1) not accepted by this JAX build; the
            # default double-buffered path is functionally identical.
            pass
    return build_call({})(*args)


def rnn_cell_forward(x, hidden, w1, b1, w2, b2, *, compute_dtype=jnp.bfloat16):
    """Convenience one-shot wrapper matching RNNCell.forward(x, hidden) with
    PyTorch-layout params. For a recurrent loop, hoist pack_rnn_cell_params /
    pad_hidden outside the loop and step with rnn_cell_forward_packed so the
    hidden state never gets re-padded / re-sliced per step."""
    hid_dim = w1.shape[0]
    packed = pack_rnn_cell_params(w1, b1, w2, b2, compute_dtype=compute_dtype)
    h_p = pad_hidden(hidden, packed[1].shape[1], compute_dtype)
    out_p = rnn_cell_forward_packed(x, h_p, packed, out_dtype=x.dtype)
    return unpad_hidden(out_p, hid_dim)


if __name__ == "__main__":
    batch = 8
    input_dim = 16
    hidden_dim = 32

    key = jax.random.PRNGKey(0)
    kx, kh, kw1, kb1, kw2, kb2 = jax.random.split(key, 6)

    x = jax.random.normal(kx, (batch, input_dim), dtype=jnp.float32)
    hidden = jax.random.normal(kh, (batch, hidden_dim), dtype=jnp.float32)

    # Deterministic parameter init (PyTorch-Linear-like uniform bounds).
    bound1 = 1.0 / (input_dim ** 0.5)
    bound2 = 1.0 / (hidden_dim ** 0.5)
    w1 = jax.random.uniform(kw1, (hidden_dim, input_dim), jnp.float32, -bound1, bound1)
    b1 = jax.random.uniform(kb1, (hidden_dim,), jnp.float32, -bound1, bound1)
    w2 = jax.random.uniform(kw2, (hidden_dim, hidden_dim), jnp.float32, -bound2, bound2)
    b2 = jax.random.uniform(kb2, (hidden_dim,), jnp.float32, -bound2, bound2)

    # Pure-JAX reference.
    ref = jnp.maximum(x @ w1.T + b1 + hidden @ w2.T + b2, 0.0)

    # 1) f32 datapath: matches the f32 reference tightly.
    out_f32 = rnn_cell_forward(x, hidden, w1, b1, w2, b2, compute_dtype=jnp.float32)
    out_f32 = jax.block_until_ready(out_f32)
    assert out_f32.shape == (batch, hidden_dim)
    assert jnp.allclose(out_f32, ref, atol=1e-5, rtol=1e-5)

    # 2) bf16 weights/activations + f32 accumulation (recommended on v6e/v7x).
    out_bf16 = rnn_cell_forward(x, hidden, w1, b1, w2, b2, compute_dtype=jnp.bfloat16)
    out_bf16 = jax.block_until_ready(out_bf16)
    assert out_bf16.shape == (batch, hidden_dim)
    assert jnp.allclose(out_bf16.astype(jnp.float32), ref, atol=5e-2, rtol=5e-2)

    # 3) Recurrent usage: pack params once, keep the hidden state in the padded
    #    layout across steps (no per-step pad/slice), unpad once at the end.
    steps = 4
    xs = jax.random.normal(jax.random.PRNGKey(1), (steps, batch, input_dim), jnp.float32)
    packed = pack_rnn_cell_params(w1, b1, w2, b2, compute_dtype=jnp.float32)
    h_p = pad_hidden(hidden, packed[1].shape[1], jnp.float32)
    for t in range(steps):
        h_p = rnn_cell_forward_packed(xs[t], h_p, packed)
    h_seq = jax.block_until_ready(unpad_hidden(h_p, hidden_dim))

    h_ref = hidden
    for t in range(steps):
        h_ref = jnp.maximum(xs[t] @ w1.T + b1 + h_ref @ w2.T + b2, 0.0)
    assert jnp.allclose(h_seq, h_ref, atol=1e-4, rtol=1e-4)

    print("KERNEL_OK")
</pallas_src>

<mosaic_0001>
module attributes {stable_mosaic.version = 11 : i64} {
  func.func @rnn_cell_kernel(%arg0: i32, %arg1: i32, %arg2: memref<8x16xf32, #tpu.memory_space<vmem>>, %arg3: memref<8x256xf32, #tpu.memory_space<vmem>>, %arg4: memref<16x256xf32, #tpu.memory_space<vmem>>, %arg5: memref<256x256xf32, #tpu.memory_space<vmem>>, %arg6: memref<1x256xf32, #tpu.memory_space<vmem>>, %arg7: memref<8x256xf32, #tpu.memory_space<vmem>>) attributes {dimension_semantics = [#tpu.dimension_semantics<parallel>, #tpu.dimension_semantics<parallel>], iteration_bounds = array<i64: 1, 1>, scalar_prefetch = 0 : i64, scratch_operands = 0 : i64, tpu.core_type = #tpu.core_type<tc>, window_params = [{transform_indices = @transform_0, window_bounds = array<i64: 8, 16>}, {transform_indices = @transform_1, window_bounds = array<i64: 8, 256>}, {pipeline_mode = #tpu.pipeline_mode<synchronous>, transform_indices = @transform_2, window_bounds = array<i64: 16, 256>}, {pipeline_mode = #tpu.pipeline_mode<synchronous>, transform_indices = @transform_3, window_bounds = array<i64: 256, 256>}, {pipeline_mode = #tpu.pipeline_mode<synchronous>, transform_indices = @transform_4, window_bounds = array<i64: 1, 256>}, {transform_indices = @transform_5, window_bounds = array<i64: 8, 256>}]} {
    %c0 = arith.constant 0 : index
    %c0_0 = arith.constant 0 : index
    %0 = vector.load %arg2[%c0, %c0_0] : memref<8x16xf32, #tpu.memory_space<vmem>>, vector<8x16xf32>
    %c0_1 = arith.constant 0 : index
    %c0_2 = arith.constant 0 : index
    %1 = vector.load %arg4[%c0_1, %c0_2] : memref<16x256xf32, #tpu.memory_space<vmem>>, vector<16x256xf32>
    %cst = arith.constant dense<0.000000e+00> : vector<8x256xf32>
    %2 = tpu.matmul %0, %1, %cst {dimension_numbers = #tpu.dot_dimension_numbers<[1], [0], [0], [1], [0, 0, 1, 1], [], []>} : vector<8x16xf32>, vector<16x256xf32>, vector<8x256xf32> -> vector<8x256xf32>
    %c0_3 = arith.constant 0 : index
    %c0_4 = arith.constant 0 : index
    %3 = vector.load %arg3[%c0_3, %c0_4] : memref<8x256xf32, #tpu.memory_space<vmem>>, vector<8x256xf32>
    %c0_5 = arith.constant 0 : index
    %c0_6 = arith.constant 0 : index
    %4 = vector.load %arg5[%c0_5, %c0_6] : memref<256x256xf32, #tpu.memory_space<vmem>>, vector<256x256xf32>
    %cst_7 = arith.constant dense<0.000000e+00> : vector<8x256xf32>
    %5 = tpu.matmul %3, %4, %cst_7 {dimension_numbers = #tpu.dot_dimension_numbers<[1], [0], [0], [1], [0, 0, 1, 1], [], []>} : vector<8x256xf32>, vector<256x256xf32>, vector<8x256xf32> -> vector<8x256xf32>
    %6 = arith.addf %2, %5 : vector<8x256xf32>
    %c0_8 = arith.constant 0 : index
    %c0_9 = arith.constant 0 : index
    %7 = vector.load %arg6[%c0_8, %c0_9] : memref<1x256xf32, #tpu.memory_space<vmem>>, vector<1x256xf32>
    %8 = vector.broadcast %7 : vector<1x256xf32> to vector<8x256xf32>
    %9 = arith.addf %6, %8 : vector<8x256xf32>
    %cst_10 = arith.constant 0.000000e+00 : f32
    %10 = vector.broadcast %cst_10 : f32 to vector<8x256xf32>
    %11 = arith.maximumf %9, %10 : vector<8x256xf32>
    %c0_11 = arith.constant 0 : index
    %c0_12 = arith.constant 0 : index
    %12 = vector.load %arg7[%c0_11, %c0_12] : memref<8x256xf32, #tpu.memory_space<vmem>>, vector<8x256xf32>
    tpu.vector_store %arg7[%c0_11, %c0_12], %11 {strides = array<i32>} : memref<8x256xf32, #tpu.memory_space<vmem>>, vector<8x256xf32>,
    return
  }
  func.func @transform_0(%arg0: i32, %arg1: i32) -> (i32, i32) {
    %c0_i32 = arith.constant 0 : i32
    %c0_i32_0 = arith.constant 0 : i32
    return %arg0, %c0_i32 : i32, i32
  }
  func.func @transform_1(%arg0: i32, %arg1: i32) -> (i32, i32) {
    %c0_i32 = arith.constant 0 : i32
    %c0_i32_0 = arith.constant 0 : i32
    return %arg0, %c0_i32 : i32, i32
  }
  func.func @transform_2(%arg0: i32, %arg1: i32) -> (i32, i32) {
    %c0_i32 = arith.constant 0 : i32
    %c0_i32_0 = arith.constant 0 : i32
    return %c0_i32, %arg1 : i32, i32
  }
  func.func @transform_3(%arg0: i32, %arg1: i32) -> (i32, i32) {
    %c0_i32 = arith.constant 0 : i32
    %c0_i32_0 = arith.constant 0 : i32
    return %c0_i32, %arg1 : i32, i32
  }
  func.func @transform_4(%arg0: i32, %arg1: i32) -> (i32, i32) {
    %c0_i32 = arith.constant 0 : i32
    %c0_i32_0 = arith.constant 0 : i32
    return %c0_i32, %arg1 : i32, i32
  }
  func.func @transform_5(%arg0: i32, %arg1: i32) -> (i32, i32) {
    %c0_i32 = arith.constant 0 : i32
    return %arg0, %arg1 : i32, i32
  }
}

module attributes {stable_mosaic.version = 11 : i64} {
  func.func @rnn_cell_kernel(%arg0: i32, %arg1: i32, %arg2: memref<8x16xf32, #tpu.memory_space<vmem>>, %arg3: memref<8x256xf32, #tpu.memory_space<vmem>>, %arg4: memref<16x256xf32, #tpu.memory_space<vmem>>, %arg5: memref<256x256xf32, #tpu.memory_space<vmem>>, %arg6: memref<1x256xf32, #tpu.memory_space<vmem>>, %arg7: memref<8x256xf32, #tpu.memory_space<vmem>>) attributes {dimension_semantics = [#tpu.dimension_semantics<parallel>, #tpu.dimension_semantics<parallel>], iteration_bounds = array<i64: 1, 1>, scalar_prefetch = 0 : i64, scratch_operands = 0 : i64, tpu.core_type = #tpu.core_type<tc>, window_params = [{transform_indices = @transform_0, window_bounds = array<i64: 8, 16>}, {transform_indices = @transform_1, window_bounds = array<i64: 8, 256>}, {transform_indices = @transform_2, window_bounds = array<i64: 16, 256>}, {transform_indices = @transform_3, window_bounds = array<i64: 256, 256>}, {transform_indices = @transform_4, window_bounds = array<i64: 1, 256>}, {transform_indices = @transform_5, window_bounds = array<i64: 8, 256>}]} {
    %c0 = arith.constant 0 : index
    %c0_0 = arith.constant 0 : index
    %0 = vector.load %arg2[%c0, %c0_0] : memref<8x16xf32, #tpu.memory_space<vmem>>, vector<8x16xf32>
    %c0_1 = arith.constant 0 : index
    %c0_2 = arith.constant 0 : index
    %1 = vector.load %arg4[%c0_1, %c0_2] : memref<16x256xf32, #tpu.memory_space<vmem>>, vector<16x256xf32>
    %cst = arith.constant dense<0.000000e+00> : vector<8x256xf32>
    %2 = tpu.matmul %0, %1, %cst {dimension_numbers = #tpu.dot_dimension_numbers<[1], [0], [0], [1], [0, 0, 1, 1], [], []>} : vector<8x16xf32>, vector<16x256xf32>, vector<8x256xf32> -> vector<8x256xf32>
    %c0_3 = arith.constant 0 : index
    %c0_4 = arith.constant 0 : index
    %3 = vector.load %arg3[%c0_3, %c0_4] : memref<8x256xf32, #tpu.memory_space<vmem>>, vector<8x256xf32>
    %c0_5 = arith.constant 0 : index
    %c0_6 = arith.constant 0 : index
    %4 = vector.load %arg5[%c0_5, %c0_6] : memref<256x256xf32, #tpu.memory_space<vmem>>, vector<256x256xf32>
    %cst_7 = arith.constant dense<0.000000e+00> : vector<8x256xf32>
    %5 = tpu.matmul %3, %4, %cst_7 {dimension_numbers = #tpu.dot_dimension_numbers<[1], [0], [0], [1], [0, 0, 1, 1], [], []>} : vector<8x256xf32>, vector<256x256xf32>, vector<8x256xf32> -> vector<8x256xf32>
    %6 = arith.addf %2, %5 : vector<8x256xf32>
    %c0_8 = arith.constant 0 : index
    %c0_9 = arith.constant 0 : index
    %7 = vector.load %arg6[%c0_8, %c0_9] : memref<1x256xf32, #tpu.memory_space<vmem>>, vector<1x256xf32>
    %8 = vector.broadcast %7 : vector<1x256xf32> to vector<8x256xf32>
    %9 = arith.addf %6, %8 : vector<8x256xf32>
    %cst_10 = arith.constant 0.000000e+00 : f32
    %10 = vector.broadcast %cst_10 : f32 to vector<8x256xf32>
    %11 = arith.maximumf %9, %10 : vector<8x256xf32>
    %c0_11 = arith.constant 0 : index
    %c0_12 = arith.constant 0 : index
    %12 = vector.load %arg7[%c0_11, %c0_12] : memref<8x256xf32, #tpu.memory_space<vmem>>, vector<8x256xf32>
    tpu.vector_store %arg7[%c0_11, %c0_12], %11 {strides = array<i32>} : memref<8x256xf32, #tpu.memory_space<vmem>>, vector<8x256xf32>,
    return
  }
  func.func @transform_0(%arg0: i32, %arg1: i32) -> (i32, i32) {
    %c0_i32 = arith.constant 0 : i32
    %c0_i32_0 = arith.constant 0 : i32
    return %arg0, %c0_i32 : i32, i32
  }
  func.func @transform_1(%arg0: i32, %arg1: i32) -> (i32, i32) {
    %c0_i32 = arith.constant 0 : i32
    %c0_i32_0 = arith.constant 0 : i32
    return %arg0, %c0_i32 : i32, i32
  }
  func.func @transform_2(%arg0: i32, %arg1: i32) -> (i32, i32) {
    %c0_i32 = arith.constant 0 : i32
    %c0_i32_0 = arith.constant 0 : i32
    return %c0_i32, %arg1 : i32, i32
  }
  func.func @transform_3(%arg0: i32, %arg1: i32) -> (i32, i32) {
    %c0_i32 = arith.constant 0 : i32
    %c0_i32_0 = arith.constant 0 : i32
    return %c0_i32, %arg1 : i32, i32
  }
  func.func @transform_4(%arg0: i32, %arg1: i32) -> (i32, i32) {
    %c0_i32 = arith.constant 0 : i32
    %c0_i32_0 = arith.constant 0 : i32
    return %c0_i32, %arg1 : i32, i32
  }
  func.func @transform_5(%arg0: i32, %arg1: i32) -> (i32, i32) {
    %c0_i32 = arith.constant 0 : i32
    return %arg0, %arg1 : i32, i32
  }
}

</mosaic_0001>

<bundles_post_ra>
// kernel: tpu_custom_call.1
= control target key start
LH: loop header
LB: loop body
LE: loop exit
PB: predicated region body
PF: predicated region fallthrough
CT: control target
= control target key end

     0   :  { %10 = vsyncpa [#allocation3], 0  ;;  %s622_s0 = inlined_call_operand.hbm [shape: f32[8,16], index: 0, kind: input, shape index: {}]   ;;  %s623_s1 = inlined_call_operand.hbm [shape: f32[8,256], index: 1, kind: input, shape index: {}]   ;;  %s624_s2 = inlined_call_operand.hbm [shape: f32[16,256], index: 2, kind: input, shape index: {}]   ;;  %s625_s3 = inlined_call_operand.hbm [shape: f32[256,256], index: 3, kind: input, shape index: {}]   ;;  %s626_s4 = inlined_call_operand.vmem [shape: f32[1,256], index: 4, kind: input, shape index: {}]   ;;  %s627_s5 = inlined_call_operand.hbm [shape: f32[8,256], index: 5, kind: output, shape index: {}]  }
   0x1   :  { %11 = vsyncpa [#allocation6], 0 }
   0x2   :  { %12 = vsyncpa [#allocation9], 0 }
   0x3   :  { %13 = vsyncpa [#allocation4], 0  ;;  %s521_s18 = smov [#allocation5]   ;;  %s522_s20 = smov [#allocation2]  }
   0x4   :  { %s30_s19 = sshll.u32 %s521_s18, 4  ;;  %s20_s21 = sshll.u32 %s522_s20, 4  ;;  %s31_s19 = int_to_ptr.vmem [resolvable:$true] %s30_s19  ;;  %s21_s21 = int_to_ptr.vmem [resolvable:$true] %s20_s21 }
   0x5   :  { %s403_s24 = scalar_lea.hbm %s623_s1, 256 }
   0x6   :  { %p404_p0 = scmp.ne.s32.totalorder %s623_s1, %s403_s24  ;;  %p407_p1 = scmp.lt.u32.totalorder %s403_s24, %s623_s1 }
   0x8   :  { %p409_p2 = pnand %p407_p1, %p404_p0 }
   0xa   :  { %412 = shalt.err (!%p409_p2)
}
   0xb   :  { %s413_s29 = scalar_lea.vmem %s31_s19, 256  ;;  %p418_p4 = scmp.lt.s32.totalorder %s31_s19, %s31_s19 }
   0xc   :  { %p414_p3 = scmp.ne.s32.totalorder %s31_s19, %s413_s29  ;;  %p419_p5 = scmp.lt.s32.totalorder %s413_s29, %s413_s29 }
   0xe   :  { %p420_p6 = por %p419_p5, %p418_p4 }
  0x10   :  { %p421_p7 = pnand %p420_p6, %p414_p3 }
  0x12   :  { %424 = shalt.err (!%p421_p7)
}
  0x13   :  { %33 = dma.hbm_to_vmem [thread:$0]  %s623_s1, 256, %s31_s19, [#allocation6]  }
  0x14   :  { %s425_s9 = scalar_lea.hbm %s622_s0, 128 }
  0x15   :  { %p426_p8 = scmp.ne.s32.totalorder %s622_s0, %s425_s9  ;;  %p429_p9 = scmp.lt.u32.totalorder %s425_s9, %s622_s0 }
  0x17   :  { %p431_p10 = pnand %p429_p9, %p426_p8 }
  0x19   :  { %434 = shalt.err (!%p431_p10)
}
  0x1a   :  { %s435_s14 = scalar_lea.vmem %s21_s21, 128  ;;  %p440_p12 = scmp.lt.s32.totalorder %s21_s21, %s21_s21 }
  0x1b   :  { %p436_p11 = scmp.ne.s32.totalorder %s21_s21, %s435_s14  ;;  %p441_p13 = scmp.lt.s32.totalorder %s435_s14, %s435_s14 }
  0x1d   :  { %p442_p0 = por %p441_p13, %p440_p12 }
  0x1f   :  { %p443_p1 = pnand %p442_p0, %p436_p11 }
  0x21   :  { %446 = shalt.err (!%p443_p1)
}
  0x22   :  { %23 = dma.hbm_to_vmem [thread:$0]  %s622_s0, 128, %s21_s21, [#allocation3]  }
  0x23   :  { %s523_s16 = smov [#allocation7]   ;;  %s447_s20 = scalar_lea.hbm %s624_s2, 512 }
  0x24   :  { %s39_s17 = sshll.u32 %s523_s16, 4  ;;  %p448_p2 = scmp.ne.s32.totalorder %s624_s2, %s447_s20  ;;  %s40_s17 = int_to_ptr.vmem [resolvable:$true] %s39_s17 }
  0x25   :  { %p451_p3 = scmp.lt.u32.totalorder %s447_s20, %s624_s2 }
  0x27   :  { %p453_p4 = pnand %p451_p3, %p448_p2 }
  0x29   :  { %456 = shalt.err (!%p453_p4)
}
  0x2a   :  { %s457_s26 = scalar_lea.vmem %s40_s17, 512  ;;  %p462_p6 = scmp.lt.s32.totalorder %s40_s17, %s40_s17 }
  0x2b   :  { %p458_p5 = scmp.ne.s32.totalorder %s40_s17, %s457_s26  ;;  %p463_p7 = scmp.lt.s32.totalorder %s457_s26, %s457_s26 }
  0x2d   :  { %p464_p8 = por %p463_p7, %p462_p6 }
  0x2f   :  { %p465_p9 = pnand %p464_p8, %p458_p5 }
  0x31   :  { %468 = shalt.err (!%p465_p9)
}
  0x32   :  { %s524_s0 = smov 256   ;;  %s525_s21 = smov 16  }
  0x33   :  { %45 = dma.hbm_to_vmem [thread:$0]  %s624_s2, 512, %s40_s17, [#allocation6], %s524_s0, %s524_s0, %s525_s21  }
  0x34   :  { %s526_s29 = smov [#allocation8]   ;;  %s469_s8 = scalar_lea.hbm %s625_s3, 8192 }
  0x35   :  { %s51_s30 = sshll.u32 %s526_s29, 4  ;;  %p470_p10 = scmp.ne.s32.totalorder %s625_s3, %s469_s8  ;;  %s52_s30 = int_to_ptr.vmem [resolvable:$true] %s51_s30 }
  0x36   :  { %p473_p11 = scmp.lt.u32.totalorder %s469_s8, %s625_s3 }
  0x38   :  { %p475_p12 = pnand %p473_p11, %p470_p10 }
  0x3a   :  { %478 = shalt.err (!%p475_p12)
}
  0x3b   :  { %s479_s13 = scalar_lea.vmem %s52_s30, 8192  ;;  %p484_p0 = scmp.lt.s32.totalorder %s52_s30, %s52_s30 }
  0x3c   :  { %p480_p13 = scmp.ne.s32.totalorder %s52_s30, %s479_s13  ;;  %p485_p1 = scmp.lt.s32.totalorder %s479_s13, %s479_s13 }
  0x3e   :  { %p486_p2 = por %p485_p1, %p484_p0 }
  0x40   :  { %p487_p3 = pnand %p486_p2, %p480_p13 }
  0x42   :  { %490 = shalt.err (!%p487_p3)
}
  0x43   :  { %57 = dma.hbm_to_vmem [thread:$0]  %s625_s3, 8192, %s52_s30, [#allocation9], %s524_s0, %s524_s0, %s525_s21  }
  0x44   :  { %513 = dma.done.wait [#allocation3], 128  }
  0x45   :  { %514 = vsyncadd [#allocation3], 4294967168 }
  0x46   :  { %515 = dma.done.wait [#allocation6], 768  }
  0x47   :  { %516 = vsyncadd [#allocation6], 4294966528 }
  0x48   :  { %517 = dma.done.wait [#allocation9], 8192  }
  0x49   :  { %518 = vsyncadd [#allocation9], 4294959104  ;;  %v527_v0 = vmov 0.0   ;;  %v80_v1 = vld [vmem:[#allocation8 + $0x8] sm:$0xff]  ;;  %v82_v2 = vld [vmem:[#allocation8 + $0x18] sm:$0xff]  ;;  %vm214_vm0 = vcmask 130048  }
  0x4a   :  { %282 = vmatprep.mubr.f32.mxu0 %v527_v0  ;;  %v79_v3 = vld [vmem:[#allocation8] sm:$0xff]  ;;  %v325_v4 = vpack.c.bf16 %v82_v2, %v80_v1  ;;  %v81_v5 = vld [vmem:[#allocation8 + $0x10] sm:$0xff]  ;;  %v84_v6 = vld [vmem:[#allocation8 + $0x28] sm:$0xff]  ;;  %s528_s15 = smov [#allocation10]  }
  0x4b   :  { %v86_v7 = vld [vmem:[#allocation8 + $0x38] sm:$0xff]  ;;  %v327_v8 = vpack.c.bf16 %v81_v5, %v79_v3  ;;  %v83_v10 = vld [vmem:[#allocation8 + $0x20] sm:$0xff]  ;;  %v85_v11 = vld [vmem:[#allocation8 + $0x30] sm:$0xff]  ;;  %s313_s16 = sshll.u32 %s528_s15, 4  ;;  %s314_s16 = int_to_ptr.vmem [resolvable:$true] %s313_s16 }
  0x4c   :  { %v329_v9 = vpack.c.bf16 %v86_v7, %v84_v6  ;;  %v88_v12 = vld [vmem:[#allocation8 + $0x48] sm:$0xff]  ;;  %326 = vmatprep.subr.bf16.mxu1 %v325_v4  ;;  %v90_v13 = vld [vmem:[#allocation8 + $0x58] sm:$0xff]  ;;  %v331_v14 = vpack.c.bf16 %v85_v11, %v83_v10  ;;  %v87_v16 = vld [vmem:[#allocation8 + $0x40] sm:$0xff]  ;;  %s491_s17 = scalar_lea.vmem %s314_s16, 256  ;;  %p496_p5 = scmp.lt.s32.totalorder %s314_s16, %s314_s16 }
  0x4d   :  { %328 = vmatpush1.bf16.msra.mxu1 %v327_v8  ;;  %v333_v15 = vpack.c.bf16 %v90_v13, %v88_v12  ;;  %v89_v17 = vld [vmem:[#allocation8 + $0x50] sm:$0xff]  ;;  %v92_v18 = vld [vmem:[#allocation8 + $0x68] sm:$0xff]  ;;  %v94_v19 = vld [vmem:[#allocation8 + $0x78] sm:$0xff]  ;;  %p492_p4 = scmp.ne.s32.totalorder %s314_s16, %s491_s17  ;;  %p497_p6 = scmp.lt.s32.totalorder %s491_s17, %s491_s17 }
  0x4e   :  { %330 = vmatprep.subr.bf16.mxu1 %v329_v9  ;;  %v335_v20 = vpack.c.bf16 %v89_v17, %v87_v16  ;;  %v337_v21 = vpack.c.bf16 %v94_v19, %v92_v18  ;;  %v91_v22 = vld [vmem:[#allocation8 + $0x60] sm:$0xff]  ;;  %v93_v23 = vld [vmem:[#allocation8 + $0x70] sm:$0xff]  ;;  %v96_v24 = vld [vmem:[#allocation8 + $0x88] sm:$0xff] }
  0x4f   :  { %v98_v25 = vld [vmem:[#allocation8 + $0x98] sm:$0xff]  ;;  %v339_v26 = vpack.c.bf16 %v93_v23, %v91_v22  ;;  %v95_v28 = vld [vmem:[#allocation8 + $0x80] sm:$0xff]  ;;  %v97_v29 = vld [vmem:[#allocation8 + $0x90] sm:$0xff]  ;;  %p498_p7 = por %p497_p6, %p496_p5 }
  0x50   :  { %v341_v27 = vpack.c.bf16 %v98_v25, %v96_v24  ;;  %v100_v30 = vld [vmem:[#allocation8 + $0xa8] sm:$0xff]  ;;  %v102_v31 = vld [vmem:[#allocation8 + $0xb8] sm:$0xff]  ;;  %v343_v32 = vpack.c.bf16 %v97_v29, %v95_v28  ;;  %v99_v34 = vld [vmem:[#allocation8 + $0xa0] sm:$0xff] }
  0x51   :  { %332 = vmatpush1.bf16.msra.mxu1 %v331_v14  ;;  %v345_v33 = vpack.c.bf16 %v102_v31, %v100_v30  ;;  %v101_v35 = vld [vmem:[#allocation8 + $0xb0] sm:$0xff]  ;;  %v104_v36 = vld [vmem:[#allocation8 + $0xc8] sm:$0xff]  ;;  %v106_v37 = vld [vmem:[#allocation8 + $0xd8] sm:$0xff]  ;;  %p499_p8 = pnand %p498_p7, %p492_p4 }
  0x52   :  { %334 = vmatprep.subr.bf16.mxu1 %v333_v15  ;;  %v347_v38 = vpack.c.bf16 %v101_v35, %v99_v34  ;;  %v103_v39 = vld [vmem:[#allocation8 + $0xc0] sm:$0xff]  ;;  %v74_v40 = vld [vmem:[#allocation7 + $0x8] sm:$0xff]  ;;  %v76_v41 = vld [vmem:[#allocation7 + $0x18] sm:$0xff]  ;;  %v349_v42 = vpack.c.bf16 %v106_v37, %v104_v36 }
  0x53   :  { %v105_v43 = vld [vmem:[#allocation8 + $0xd0] sm:$0xff]  ;;  %v389_v44 = vpack.c.bf16 %v76_v41, %v74_v40  ;;  %v73_v45 = vld [vmem:[#allocation7] sm:$0xff]  ;;  %v108_v47 = vld [vmem:[#allocation8 + $0xe8] sm:$0xff] }
  0x54   :  { %v75_v46 = vld [vmem:[#allocation7 + $0x10] sm:$0xff]  ;;  %v110_v48 = vld [vmem:[#allocation8 + $0xf8] sm:$0xff]  ;;  %v351_v51 = vpack.c.bf16 %v105_v43, %v103_v39  ;;  %v72_v52 = vld [vmem:[#allocation2] sm:$0xff] }
  0x55   :  { %336 = vmatpush1.bf16.msra.mxu1 %v335_v20  ;;  %v391_v49 = vpack.c.bf16 %v75_v46, %v73_v45  ;;  %v78_v50 = vld [vmem:[#allocation5 + $0x8] sm:$0xff]  ;;  %390 = vmatprep.subr.bf16.mxu0 %v389_v44  ;;  %v353_v53 = vpack.c.bf16 %v110_v48, %v108_v47  ;;  %v107_v54 = vld [vmem:[#allocation8 + $0xe0] sm:$0xff]  ;;  %v109_v55 = vld [vmem:[#allocation8 + $0xf0] sm:$0xff]  ;;  %v291_v44 = vlaneseq }
  0x56   :  { %338 = vmatprep.subr.bf16.mxu1 %v337_v21  ;;  %207 = vmatprep.mubr.f32.mxu1 %v78_v50  ;;  %v112_v56 = vld [vmem:[#allocation8 + $0x108] sm:$0xff]  ;;  %v114_v57 = vld [vmem:[#allocation8 + $0x118] sm:$0xff]  ;;  %v355_v58 = vpack.c.bf16 %v109_v55, %v107_v54  ;;  %v111_v60 = vld [vmem:[#allocation8 + $0x100] sm:$0xff] }
  0x57   :  { %392 = vmatpush1.bf16.msra.mxu0 %v391_v49  ;;  %v357_v59 = vpack.c.bf16 %v114_v57, %v112_v56  ;;  %v113_v61 = vld [vmem:[#allocation8 + $0x110] sm:$0xff]  ;;  %v116_v62 = vld [vmem:[#allocation8 + $0x128] sm:$0xff]  ;;  %v118_v63 = vld [vmem:[#allocation8 + $0x138] sm:$0xff]  ;;  %v292_v45 = vshrl.u32 %v291_v44, 7 }
  0x58   :  { %v359_v0 = vpack.c.bf16 %v113_v61, %v111_v60  ;;  %v361_v1 = vpack.c.bf16 %v118_v63, %v116_v62  ;;  %v115_v2 = vld [vmem:[#allocation8 + $0x120] sm:$0xff]  ;;  %v117_v3 = vld [vmem:[#allocation8 + $0x130] sm:$0xff]  ;;  %v120_v4 = vld [vmem:[#allocation8 + $0x148] sm:$0xff] }
  0x59   :  { %340 = vmatpush1.bf16.msra.mxu1 %v339_v26  ;;  %v122_v5 = vld [vmem:[#allocation8 + $0x158] sm:$0xff]  ;;  %v363_v6 = vpack.c.bf16 %v117_v3, %v115_v2  ;;  %v119_v8 = vld [vmem:[#allocation8 + $0x140] sm:$0xff]  ;;  %v121_v9 = vld [vmem:[#allocation8 + $0x150] sm:$0xff]  ;;  %v293_v46 = vsub.s32 0, %v292_v45  ;;  %v297_v48 = vsub.s32 1, %v292_v45 }
  0x5a   :  { %342 = vmatprep.subr.bf16.mxu1 %v341_v27  ;;  %324 = vmatmul.mubr.msk.f32.vlgmr.msra.gmra.mrb[0].mxu0 %vm214_vm0, %v72_v52  ;;  %v365_v7 = vpack.c.bf16 %v122_v5, %v120_v4  ;;  %v124_v10 = vld [vmem:[#allocation8 + $0x168] sm:$0xff]  ;;  %v126_v11 = vld [vmem:[#allocation8 + $0x178] sm:$0xff]  ;;  %v367_v12 = vpack.c.bf16 %v121_v9, %v119_v8  ;;  %v123_v14 = vld [vmem:[#allocation8 + $0x160] sm:$0xff] }
  0x5b   :  { %v369_v13 = vpack.c.bf16 %v126_v11, %v124_v10  ;;  %v125_v15 = vld [vmem:[#allocation8 + $0x170] sm:$0xff]  ;;  %v128_v16 = vld [vmem:[#allocation8 + $0x188] sm:$0xff]  ;;  %v130_v17 = vld [vmem:[#allocation8 + $0x198] sm:$0xff] }
  0x5c   :  { %v371_v18 = vpack.c.bf16 %v125_v15, %v123_v14  ;;  %v373_v19 = vpack.c.bf16 %v130_v17, %v128_v16  ;;  %v127_v20 = vld [vmem:[#allocation8 + $0x180] sm:$0xff]  ;;  %v129_v21 = vld [vmem:[#allocation8 + $0x190] sm:$0xff]  ;;  %v132_v22 = vld [vmem:[#allocation8 + $0x1a8] sm:$0xff] }
  0x5d   :  { %344 = vmatpush1.bf16.msra.mxu1 %v343_v32  ;;  %v134_v23 = vld [vmem:[#allocation8 + $0x1b8] sm:$0xff]  ;;  %v375_v24 = vpack.c.bf16 %v129_v21, %v127_v20  ;;  %v131_v26 = vld [vmem:[#allocation8 + $0x1a0] sm:$0xff]  ;;  %v133_v27 = vld [vmem:[#allocation8 + $0x1b0] sm:$0xff] }
  0x5e   :  { %346 = vmatprep.subr.bf16.mxu1 %v345_v33  ;;  %v377_v25 = vpack.c.bf16 %v134_v23, %v132_v22  ;;  %v136_v28 = vld [vmem:[#allocation8 + $0x1c8] sm:$0xff]  ;;  %v138_v29 = vld [vmem:[#allocation8 + $0x1d8] sm:$0xff]  ;;  %v379_v30 = vpack.c.bf16 %v133_v27, %v131_v26  ;;  %v135_v32 = vld [vmem:[#allocation8 + $0x1c0] sm:$0xff] }
  0x5f   :  { %v381_v31 = vpack.c.bf16 %v138_v29, %v136_v28  ;;  %v137_v33 = vld [vmem:[#allocation8 + $0x1d0] sm:$0xff]  ;;  %v140_v34 = vld [vmem:[#allocation8 + $0x1e8] sm:$0xff]  ;;  %v142_v35 = vld [vmem:[#allocation8 + $0x1f8] sm:$0xff] }
  0x60   :  { %v383_v36 = vpack.c.bf16 %v137_v33, %v135_v32  ;;  %v385_v37 = vpack.c.bf16 %v142_v35, %v140_v34  ;;  %v141_v39 = vld [vmem:[#allocation8 + $0x1f0] sm:$0xff]  ;;  %v289_v47 = vld [vmem:[%s626_s4] sm:$0x3] }
  0x61   :  { %348 = vmatpush1.bf16.msra.mxu1 %v347_v38  ;;  %v139_v38 = vld [vmem:[#allocation8 + $0x1e0] sm:$0xff]  ;;  %v77_v41 = vld [vmem:[#allocation5] sm:$0xff]  ;;  %v294_v49 = vrot.slane %v289_v47, %v293_v46 }
  0x62   :  { %350 = vmatprep.subr.bf16.mxu1 %v349_v42  ;;  %v387_v40 = vpack.c.bf16 %v141_v39, %v139_v38 }
  0x65   :  { %352 = vmatpush1.bf16.msra.mxu1 %v351_v51  ;;  %v298_v51 = vrot.slane %v289_v47, %v297_v48 }
  0x66   :  { %354 = vmatprep.subr.bf16.mxu1 %v353_v53 }
  0x69   :  { %356 = vmatpush1.bf16.msra.mxu1 %v355_v58 }
  0x6a   :  { %358 = vmatprep.subr.bf16.mxu1 %v357_v59 }
  0x6d   :  { %360 = vmatpush1.bf16.msra.mxu1 %v359_v0 }
  0x6e   :  { %362 = vmatprep.subr.bf16.mxu1 %v361_v1 }
  0x71   :  { %364 = vmatpush1.bf16.msra.mxu1 %v363_v6 }
  0x72   :  { %366 = vmatprep.subr.bf16.mxu1 %v365_v7 }
  0x75   :  { %368 = vmatpush1.bf16.msra.mxu1 %v367_v12 }
  0x76   :  { %370 = vmatprep.subr.bf16.mxu1 %v369_v13 }
  0x79   :  { %372 = vmatpush1.bf16.msra.mxu1 %v371_v18 }
  0x7a   :  { %374 = vmatprep.subr.bf16.mxu1 %v373_v19 }
  0x7d   :  { %376 = vmatpush1.bf16.msra.mxu1 %v375_v24 }
  0x7e   :  { %378 = vmatprep.subr.bf16.mxu1 %v377_v25 }
  0x81   :  { %380 = vmatpush1.bf16.msra.mxu1 %v379_v30 }
  0x82   :  { %382 = vmatprep.subr.bf16.mxu1 %v381_v31 }
  0x85   :  { %384 = vmatpush1.bf16.msra.mxu1 %v383_v36 }
  0x86   :  { %386 = vmatprep.subr.bf16.mxu1 %v385_v37 }
  0x89   :  { %388 = vmatpush1.bf16.msra.mxu1 %v387_v40 }
  0x8c   :  { %208 = vmatmul.mubr.f32.vlgmr.msra.gmra.mrb[0].mxu1 %v77_v41 }
 0x12d   :  { %v284_v42 = vpop.f32.mrb[0].mxu0 }
 0x12e   :  { %v286_v43 = vpop.f32.mrb[1].mxu0 }
 0x15f   :  { %v209_v50 = vpop.f32.mrb[0].mxu1 }
 0x160   :  { %v285_v52 = vadd.f32 %v284_v42, %v209_v50  ;;  %v211_v53 = vpop.f32.mrb[1].mxu1 }
 0x161   :  { %v287_v54 = vadd.f32 %v286_v43, %v211_v53 }
 0x162   :  { %v301_v55 = vadd.f32 %v294_v49, %v285_v52 }
 0x163   :  { %v302_v56 = vadd.f32 %v298_v51, %v287_v54 }
 0x164   :  { %v303_v57 = vmax.f32 %v301_v55, 0.0 }
 0x165   :  { %v304_v58 = vmax.f32 %v302_v56, 0.0 }
 0x166   :  { %305 = vst [vmem:[#allocation10] sm:$0xff] %v303_v57 }
 0x167   :  { %306 = vst [vmem:[#allocation10 + $0x8] sm:$0xff] %v304_v58 }
 0x168   :  { %502 = shalt.err (!%p499_p8)
}
 0x169   :  { %s503_s19 = scalar_lea.hbm %s627_s5, 256 }
 0x16a   :  { %p504_p9 = scmp.ne.s32.totalorder %s627_s5, %s503_s19  ;;  %p507_p10 = scmp.lt.u32.totalorder %s503_s19, %s627_s5 }
 0x16c   :  { %p509_p11 = pnand %p507_p10, %p504_p9 }
 0x16e   :  { %512 = shalt.err (!%p509_p11)
}
 0x16f   :  { %316 = dma.vmem_to_hbm [thread:$0]  %s314_s16, 256, %s627_s5, [#allocation4]  }
 0x170   :  { %519 = dma.done.wait [#allocation4], 256  }
 0x171   :  { %520 = vsyncadd [#allocation4], 4294967040 }
 0x172   :  { %320 = vsyncpa [#allocation3], 1 }
 0x173   :  { %321 = vsyncpa [#allocation6], 1 }
 0x174   :  { %322 = vsyncpa [#allocation9], 1 }
 0x175   :  { %323 = vsyncpa [#allocation4], 1 }

// kernel: tpu_custom_call.1
= control target key start
LH: loop header
LB: loop body
LE: loop exit
PB: predicated region body
PF: predicated region fallthrough
CT: control target
= control target key end

     0   :  { %10 = vsyncpa [#allocation3], 0  ;;  %s622_s0 = inlined_call_operand.hbm [shape: f32[8,16], index: 0, kind: input, shape index: {}]   ;;  %s623_s1 = inlined_call_operand.hbm [shape: f32[8,256], index: 1, kind: input, shape index: {}]   ;;  %s624_s2 = inlined_call_operand.hbm [shape: f32[16,256], index: 2, kind: input, shape index: {}]   ;;  %s625_s3 = inlined_call_operand.hbm [shape: f32[256,256], index: 3, kind: input, shape index: {}]   ;;  %s626_s4 = inlined_call_operand.vmem [shape: f32[1,256], index: 4, kind: input, shape index: {}]   ;;  %s627_s5 = inlined_call_operand.hbm [shape: f32[8,256], index: 5, kind: output, shape index: {}]  }
   0x1   :  { %11 = vsyncpa [#allocation6], 0 }
   0x2   :  { %12 = vsyncpa [#allocation9], 0 }
   0x3   :  { %13 = vsyncpa [#allocation4], 0  ;;  %s521_s18 = smov [#allocation5]   ;;  %s522_s20 = smov [#allocation2]  }
   0x4   :  { %s30_s19 = sshll.u32 %s521_s18, 4  ;;  %s20_s21 = sshll.u32 %s522_s20, 4  ;;  %s31_s19 = int_to_ptr.vmem [resolvable:$true] %s30_s19  ;;  %s21_s21 = int_to_ptr.vmem [resolvable:$true] %s20_s21 }
   0x5   :  { %s403_s24 = scalar_lea.hbm %s623_s1, 256 }
   0x6   :  { %p404_p0 = scmp.ne.s32.totalorder %s623_s1, %s403_s24  ;;  %p407_p1 = scmp.lt.u32.totalorder %s403_s24, %s623_s1 }
   0x8   :  { %p409_p2 = pnand %p407_p1, %p404_p0 }
   0xa   :  { %412 = shalt.err (!%p409_p2)
}
   0xb   :  { %s413_s29 = scalar_lea.vmem %s31_s19, 256  ;;  %p418_p4 = scmp.lt.s32.totalorder %s31_s19, %s31_s19 }
   0xc   :  { %p414_p3 = scmp.ne.s32.totalorder %s31_s19, %s413_s29  ;;  %p419_p5 = scmp.lt.s32.totalorder %s413_s29, %s413_s29 }
   0xe   :  { %p420_p6 = por %p419_p5, %p418_p4 }
  0x10   :  { %p421_p7 = pnand %p420_p6, %p414_p3 }
  0x12   :  { %424 = shalt.err (!%p421_p7)
}
  0x13   :  { %33 = dma.hbm_to_vmem [thread:$0]  %s623_s1, 256, %s31_s19, [#allocation6]  }
  0x14   :  { %s425_s9 = scalar_lea.hbm %s622_s0, 128 }
  0x15   :  { %p426_p8 = scmp.ne.s32.totalorder %s622_s0, %s425_s9  ;;  %p429_p9 = scmp.lt.u32.totalorder %s425_s9, %s622_s0 }
  0x17   :  { %p431_p10 = pnand %p429_p9, %p426_p8 }
  0x19   :  { %434 = shalt.err (!%p431_p10)
}
  0x1a   :  { %s435_s14 = scalar_lea.vmem %s21_s21, 128  ;;  %p440_p12 = scmp.lt.s32.totalorder %s21_s21, %s21_s21 }
  0x1b   :  { %p436_p11 = scmp.ne.s32.totalorder %s21_s21, %s435_s14  ;;  %p441_p13 = scmp.lt.s32.totalorder %s435_s14, %s435_s14 }
  0x1d   :  { %p442_p0 = por %p441_p13, %p440_p12 }
  0x1f   :  { %p443_p1 = pnand %p442_p0, %p436_p11 }
  0x21   :  { %446 = shalt.err (!%p443_p1)
}
  0x22   :  { %23 = dma.hbm_to_vmem [thread:$0]  %s622_s0, 128, %s21_s21, [#allocation3]  }
  0x23   :  { %s523_s16 = smov [#allocation7]   ;;  %s447_s20 = scalar_lea.hbm %s624_s2, 512 }
  0x24   :  { %s39_s17 = sshll.u32 %s523_s16, 4  ;;  %p448_p2 = scmp.ne.s32.totalorder %s624_s2, %s447_s20  ;;  %s40_s17 = int_to_ptr.vmem [resolvable:$true] %s39_s17 }
  0x25   :  { %p451_p3 = scmp.lt.u32.totalorder %s447_s20, %s624_s2 }
  0x27   :  { %p453_p4 = pnand %p451_p3, %p448_p2 }
  0x29   :  { %456 = shalt.err (!%p453_p4)
}
  0x2a   :  { %s457_s26 = scalar_lea.vmem %s40_s17, 512  ;;  %p462_p6 = scmp.lt.s32.totalorder %s40_s17, %s40_s17 }
  0x2b   :  { %p458_p5 = scmp.ne.s32.totalorder %s40_s17, %s457_s26  ;;  %p463_p7 = scmp.lt.s32.totalorder %s457_s26, %s457_s26 }
  0x2d   :  { %p464_p8 = por %p463_p7, %p462_p6 }
  0x2f   :  { %p465_p9 = pnand %p464_p8, %p458_p5 }
  0x31   :  { %468 = shalt.err (!%p465_p9)
}
  0x32   :  { %s524_s0 = smov 256   ;;  %s525_s21 = smov 16  }
  0x33   :  { %45 = dma.hbm_to_vmem [thread:$0]  %s624_s2, 512, %s40_s17, [#allocation6], %s524_s0, %s524_s0, %s525_s21  }
  0x34   :  { %s526_s29 = smov [#allocation8]   ;;  %s469_s8 = scalar_lea.hbm %s625_s3, 8192 }
  0x35   :  { %s51_s30 = sshll.u32 %s526_s29, 4  ;;  %p470_p10 = scmp.ne.s32.totalorder %s625_s3, %s469_s8  ;;  %s52_s30 = int_to_ptr.vmem [resolvable:$true] %s51_s30 }
  0x36   :  { %p473_p11 = scmp.lt.u32.totalorder %s469_s8, %s625_s3 }
  0x38   :  { %p475_p12 = pnand %p473_p11, %p470_p10 }
  0x3a   :  { %478 = shalt.err (!%p475_p12)
}
  0x3b   :  { %s479_s13 = scalar_lea.vmem %s52_s30, 8192  ;;  %p484_p0 = scmp.lt.s32.totalorder %s52_s30, %s52_s30 }
  0x3c   :  { %p480_p13 = scmp.ne.s32.totalorder %s52_s30, %s479_s13  ;;  %p485_p1 = scmp.lt.s32.totalorder %s479_s13, %s479_s13 }
  0x3e   :  { %p486_p2 = por %p485_p1, %p484_p0 }
  0x40   :  { %p487_p3 = pnand %p486_p2, %p480_p13 }
  0x42   :  { %490 = shalt.err (!%p487_p3)
}
  0x43   :  { %57 = dma.hbm_to_vmem [thread:$0]  %s625_s3, 8192, %s52_s30, [#allocation9], %s524_s0, %s524_s0, %s525_s21  }
  0x44   :  { %513 = dma.done.wait [#allocation3], 128  }
  0x45   :  { %514 = vsyncadd [#allocation3], 4294967168 }
  0x46   :  { %515 = dma.done.wait [#allocation6], 768  }
  0x47   :  { %516 = vsyncadd [#allocation6], 4294966528 }
  0x48   :  { %517 = dma.done.wait [#allocation9], 8192  }
  0x49   :  { %518 = vsyncadd [#allocation9], 4294959104  ;;  %v527_v0 = vmov 0.0   ;;  %v80_v1 = vld [vmem:[#allocation8 + $0x8] sm:$0xff]  ;;  %v82_v2 = vld [vmem:[#allocation8 + $0x18] sm:$0xff]  ;;  %vm214_vm0 = vcmask 130048  }
  0x4a   :  { %282 = vmatprep.mubr.f32.mxu0 %v527_v0  ;;  %v79_v3 = vld [vmem:[#allocation8] sm:$0xff]  ;;  %v325_v4 = vpack.c.bf16 %v82_v2, %v80_v1  ;;  %v81_v5 = vld [vmem:[#allocation8 + $0x10] sm:$0xff]  ;;  %v84_v6 = vld [vmem:[#allocation8 + $0x28] sm:$0xff]  ;;  %s528_s15 = smov [#allocation10]  }
  0x4b   :  { %v86_v7 = vld [vmem:[#allocation8 + $0x38] sm:$0xff]  ;;  %v327_v8 = vpack.c.bf16 %v81_v5, %v79_v3  ;;  %v83_v10 = vld [vmem:[#allocation8 + $0x20] sm:$0xff]  ;;  %v85_v11 = vld [vmem:[#allocation8 + $0x30] sm:$0xff]  ;;  %s313_s16 = sshll.u32 %s528_s15, 4  ;;  %s314_s16 = int_to_ptr.vmem [resolvable:$true] %s313_s16 }
  0x4c   :  { %v329_v9 = vpack.c.bf16 %v86_v7, %v84_v6  ;;  %v88_v12 = vld [vmem:[#allocation8 + $0x48] sm:$0xff]  ;;  %326 = vmatprep.subr.bf16.mxu1 %v325_v4  ;;  %v90_v13 = vld [vmem:[#allocation8 + $0x58] sm:$0xff]  ;;  %v331_v14 = vpack.c.bf16 %v85_v11, %v83_v10  ;;  %v87_v16 = vld [vmem:[#allocation8 + $0x40] sm:$0xff]  ;;  %s491_s17 = scalar_lea.vmem %s314_s16, 256  ;;  %p496_p5 = scmp.lt.s32.totalorder %s314_s16, %s314_s16 }
  0x4d   :  { %328 = vmatpush1.bf16.msra.mxu1 %v327_v8  ;;  %v333_v15 = vpack.c.bf16 %v90_v13, %v88_v12  ;;  %v89_v17 = vld [vmem:[#allocation8 + $0x50] sm:$0xff]  ;;  %v92_v18 = vld [vmem:[#allocation8 + $0x68] sm:$0xff]  ;;  %v94_v19 = vld [vmem:[#allocation8 + $0x78] sm:$0xff]  ;;  %p492_p4 = scmp.ne.s32.totalorder %s314_s16, %s491_s17  ;;  %p497_p6 = scmp.lt.s32.totalorder %s491_s17, %s491_s17 }
  0x4e   :  { %330 = vmatprep.subr.bf16.mxu1 %v329_v9  ;;  %v335_v20 = vpack.c.bf16 %v89_v17, %v87_v16  ;;  %v337_v21 = vpack.c.bf16 %v94_v19, %v92_v18  ;;  %v91_v22 = vld [vmem:[#allocation8 + $0x60] sm:$0xff]  ;;  %v93_v23 = vld [vmem:[#allocation8 + $0x70] sm:$0xff]  ;;  %v96_v24 = vld [vmem:[#allocation8 + $0x88] sm:$0xff] }
  0x4f   :  { %v98_v25 = vld [vmem:[#allocation8 + $0x98] sm:$0xff]  ;;  %v339_v26 = vpack.c.bf16 %v93_v23, %v91_v22  ;;  %v95_v28 = vld [vmem:[#allocation8 + $0x80] sm:$0xff]  ;;  %v97_v29 = vld [vmem:[#allocation8 + $0x90] sm:$0xff]  ;;  %p498_p7 = por %p497_p6, %p496_p5 }
  0x50   :  { %v341_v27 = vpack.c.bf16 %v98_v25, %v96_v24  ;;  %v100_v30 = vld [vmem:[#allocation8 + $0xa8] sm:$0xff]  ;;  %v102_v31 = vld [vmem:[#allocation8 + $0xb8] sm:$0xff]  ;;  %v343_v32 = vpack.c.bf16 %v97_v29, %v95_v28  ;;  %v99_v34 = vld [vmem:[#allocation8 + $0xa0] sm:$0xff] }
  0x51   :  { %332 = vmatpush1.bf16.msra.mxu1 %v331_v14  ;;  %v345_v33 = vpack.c.bf16 %v102_v31, %v100_v30  ;;  %v101_v35 = vld [vmem:[#allocation8 + $0xb0] sm:$0xff]  ;;  %v104_v36 = vld [vmem:[#allocation8 + $0xc8] sm:$0xff]  ;;  %v106_v37 = vld [vmem:[#allocation8 + $0xd8] sm:$0xff]  ;;  %p499_p8 = pnand %p498_p7, %p492_p4 }
  0x52   :  { %334 = vmatprep.subr.bf16.mxu1 %v333_v15  ;;  %v347_v38 = vpack.c.bf16 %v101_v35, %v99_v34  ;;  %v103_v39 = vld [vmem:[#allocation8 + $0xc0] sm:$0xff]  ;;  %v74_v40 = vld [vmem:[#allocation7 + $0x8] sm:$0xff]  ;;  %v76_v41 = vld [vmem:[#allocation7 + $0x18] sm:$0xff]  ;;  %v349_v42 = vpack.c.bf16 %v106_v37, %v104_v36 }
  0x53   :  { %v105_v43 = vld [vmem:[#allocation8 + $0xd0] sm:$0xff]  ;;  %v389_v44 = vpack.c.bf16 %v76_v41, %v74_v40  ;;  %v73_v45 = vld [vmem:[#allocation7] sm:$0xff]  ;;  %v108_v47 = vld [vmem:[#allocation8 + $0xe8] sm:$0xff] }
  0x54   :  { %v75_v46 = vld [vmem:[#allocation7 + $0x10] sm:$0xff]  ;;  %v110_v48 = vld [vmem:[#allocation8 + $0xf8] sm:$0xff]  ;;  %v351_v51 = vpack.c.bf16 %v105_v43, %v103_v39  ;;  %v72_v52 = vld [vmem:[#allocation2] sm:$0xff] }
  0x55   :  { %336 = vmatpush1.bf16.msra.mxu1 %v335_v20  ;;  %v391_v49 = vpack.c.bf16 %v75_v46, %v73_v45  ;;  %v78_v50 = vld [vmem:[#allocation5 + $0x8] sm:$0xff]  ;;  %390 = vmatprep.subr.bf16.mxu0 %v389_v44  ;;  %v353_v53 = vpack.c.bf16 %v110_v48, %v108_v47  ;;  %v107_v54 = vld [vmem:[#allocation8 + $0xe0] sm:$0xff]  ;;  %v109_v55 = vld [vmem:[#allocation8 + $0xf0] sm:$0xff]  ;;  %v291_v44 = vlaneseq }
  0x56   :  { %338 = vmatprep.subr.bf16.mxu1 %v337_v21  ;;  %207 = vmatprep.mubr.f32.mxu1 %v78_v50  ;;  %v112_v56 = vld [vmem:[#allocation8 + $0x108] sm:$0xff]  ;;  %v114_v57 = vld [vmem:[#allocation8 + $0x118] sm:$0xff]  ;;  %v355_v58 = vpack.c.bf16 %v109_v55, %v107_v54  ;;  %v111_v60 = vld [vmem:[#allocation8 + $0x100] sm:$0xff] }
  0x57   :  { %392 = vmatpush1.bf16.msra.mxu0 %v391_v49  ;;  %v357_v59 = vpack.c.bf16 %v114_v57, %v112_v56  ;;  %v113_v61 = vld [vmem:[#allocation8 + $0x110] sm:$0xff]  ;;  %v116_v62 = vld [vmem:[#allocation8 + $0x128] sm:$0xff]  ;;  %v118_v63 = vld [vmem:[#allocation8 + $0x138] sm:$0xff]  ;;  %v292_v45 = vshrl.u32 %v291_v44, 7 }
  0x58   :  { %v359_v0 = vpack.c.bf16 %v113_v61, %v111_v60  ;;  %v361_v1 = vpack.c.bf16 %v118_v63, %v116_v62  ;;  %v115_v2 = vld [vmem:[#allocation8 + $0x120] sm:$0xff]  ;;  %v117_v3 = vld [vmem:[#allocation8 + $0x130] sm:$0xff]  ;;  %v120_v4 = vld [vmem:[#allocation8 + $0x148] sm:$0xff] }
  0x59   :  { %340 = vmatpush1.bf16.msra.mxu1 %v339_v26  ;;  %v122_v5 = vld [vmem:[#allocation8 + $0x158] sm:$0xff]  ;;  %v363_v6 = vpack.c.bf16 %v117_v3, %v115_v2  ;;  %v119_v8 = vld [vmem:[#allocation8 + $0x140] sm:$0xff]  ;;  %v121_v9 = vld [vmem:[#allocation8 + $0x150] sm:$0xff]  ;;  %v293_v46 = vsub.s32 0, %v292_v45  ;;  %v297_v48 = vsub.s32 1, %v292_v45 }
  0x5a   :  { %342 = vmatprep.subr.bf16.mxu1 %v341_v27  ;;  %324 = vmatmul.mubr.msk.f32.vlgmr.msra.gmra.mrb[0].mxu0 %vm214_vm0, %v72_v52  ;;  %v365_v7 = vpack.c.bf16 %v122_v5, %v120_v4  ;;  %v124_v10 = vld [vmem:[#allocation8 + $0x168] sm:$0xff]  ;;  %v126_v11 = vld [vmem:[#allocation8 + $0x178] sm:$0xff]  ;;  %v367_v12 = vpack.c.bf16 %v121_v9, %v119_v8  ;;  %v123_v14 = vld [vmem:[#allocation8 + $0x160] sm:$0xff] }
  0x5b   :  { %v369_v13 = vpack.c.bf16 %v126_v11, %v124_v10  ;;  %v125_v15 = vld [vmem:[#allocation8 + $0x170] sm:$0xff]  ;;  %v128_v16 = vld [vmem:[#allocation8 + $0x188] sm:$0xff]  ;;  %v130_v17 = vld [vmem:[#allocation8 + $0x198] sm:$0xff] }
  0x5c   :  { %v371_v18 = vpack.c.bf16 %v125_v15, %v123_v14  ;;  %v373_v19 = vpack.c.bf16 %v130_v17, %v128_v16  ;;  %v127_v20 = vld [vmem:[#allocation8 + $0x180] sm:$0xff]  ;;  %v129_v21 = vld [vmem:[#allocation8 + $0x190] sm:$0xff]  ;;  %v132_v22 = vld [vmem:[#allocation8 + $0x1a8] sm:$0xff] }
  0x5d   :  { %344 = vmatpush1.bf16.msra.mxu1 %v343_v32  ;;  %v134_v23 = vld [vmem:[#allocation8 + $0x1b8] sm:$0xff]  ;;  %v375_v24 = vpack.c.bf16 %v129_v21, %v127_v20  ;;  %v131_v26 = vld [vmem:[#allocation8 + $0x1a0] sm:$0xff]  ;;  %v133_v27 = vld [vmem:[#allocation8 + $0x1b0] sm:$0xff] }
  0x5e   :  { %346 = vmatprep.subr.bf16.mxu1 %v345_v33  ;;  %v377_v25 = vpack.c.bf16 %v134_v23, %v132_v22  ;;  %v136_v28 = vld [vmem:[#allocation8 + $0x1c8] sm:$0xff]  ;;  %v138_v29 = vld [vmem:[#allocation8 + $0x1d8] sm:$0xff]  ;;  %v379_v30 = vpack.c.bf16 %v133_v27, %v131_v26  ;;  %v135_v32 = vld [vmem:[#allocation8 + $0x1c0] sm:$0xff] }
  0x5f   :  { %v381_v31 = vpack.c.bf16 %v138_v29, %v136_v28  ;;  %v137_v33 = vld [vmem:[#allocation8 + $0x1d0] sm:$0xff]  ;;  %v140_v34 = vld [vmem:[#allocation8 + $0x1e8] sm:$0xff]  ;;  %v142_v35 = vld [vmem:[#allocation8 + $0x1f8] sm:$0xff] }
  0x60   :  { %v383_v36 = vpack.c.bf16 %v137_v33, %v135_v32  ;;  %v385_v37 = vpack.c.bf16 %v142_v35, %v140_v34  ;;  %v141_v39 = vld [vmem:[#allocation8 + $0x1f0] sm:$0xff]  ;;  %v289_v47 = vld [vmem:[%s626_s4] sm:$0x3] }
  0x61   :  { %348 = vmatpush1.bf16.msra.mxu1 %v347_v38  ;;  %v139_v38 = vld [vmem:[#allocation8 + $0x1e0] sm:$0xff]  ;;  %v77_v41 = vld [vmem:[#allocation5] sm:$0xff]  ;;  %v294_v49 = vrot.slane %v289_v47, %v293_v46 }
  0x62   :  { %350 = vmatprep.subr.bf16.mxu1 %v349_v42  ;;  %v387_v40 = vpack.c.bf16 %v141_v39, %v139_v38 }
  0x65   :  { %352 = vmatpush1.bf16.msra.mxu1 %v351_v51  ;;  %v298_v51 = vrot.slane %v289_v47, %v297_v48 }
  0x66   :  { %354 = vmatprep.subr.bf16.mxu1 %v353_v53 }
  0x69   :  { %356 = vmatpush1.bf16.msra.mxu1 %v355_v58 }
  0x6a   :  { %358 = vmatprep.subr.bf16.mxu1 %v357_v59 }
  0x6d   :  { %360 = vmatpush1.bf16.msra.mxu1 %v359_v0 }
  0x6e   :  { %362 = vmatprep.subr.bf16.mxu1 %v361_v1 }
  0x71   :  { %364 = vmatpush1.bf16.msra.mxu1 %v363_v6 }
  0x72   :  { %366 = vmatprep.subr.bf16.mxu1 %v365_v7 }
  0x75   :  { %368 = vmatpush1.bf16.msra.mxu1 %v367_v12 }
  0x76   :  { %370 = vmatprep.subr.bf16.mxu1 %v369_v13 }
  0x79   :  { %372 = vmatpush1.bf16.msra.mxu1 %v371_v18 }
  0x7a   :  { %374 = vmatprep.subr.bf16.mxu1 %v373_v19 }
  0x7d   :  { %376 = vmatpush1.bf16.msra.mxu1 %v375_v24 }
  0x7e   :  { %378 = vmatprep.subr.bf16.mxu1 %v377_v25 }
  0x81   :  { %380 = vmatpush1.bf16.msra.mxu1 %v379_v30 }
  0x82   :  { %382 = vmatprep.subr.bf16.mxu1 %v381_v31 }
  0x85   :  { %384 = vmatpush1.bf16.msra.mxu1 %v383_v36 }
  0x86   :  { %386 = vmatprep.subr.bf16.mxu1 %v385_v37 }
  0x89   :  { %388 = vmatpush1.bf16.msra.mxu1 %v387_v40 }
  0x8c   :  { %208 = vmatmul.mubr.f32.vlgmr.msra.gmra.mrb[0].mxu1 %v77_v41 }
 0x12d   :  { %v284_v42 = vpop.f32.mrb[0].mxu0 }
 0x12e   :  { %v286_v43 = vpop.f32.mrb[1].mxu0 }
 0x15f   :  { %v209_v50 = vpop.f32.mrb[0].mxu1 }
 0x160   :  { %v285_v52 = vadd.f32 %v284_v42, %v209_v50  ;;  %v211_v53 = vpop.f32.mrb[1].mxu1 }
 0x161   :  { %v287_v54 = vadd.f32 %v286_v43, %v211_v53 }
 0x162   :  { %v301_v55 = vadd.f32 %v294_v49, %v285_v52 }
 0x163   :  { %v302_v56 = vadd.f32 %v298_v51, %v287_v54 }
 0x164   :  { %v303_v57 = vmax.f32 %v301_v55, 0.0 }
 0x165   :  { %v304_v58 = vmax.f32 %v302_v56, 0.0 }
 0x166   :  { %305 = vst [vmem:[#allocation10] sm:$0xff] %v303_v57 }
 0x167   :  { %306 = vst [vmem:[#allocation10 + $0x8] sm:$0xff] %v304_v58 }
 0x168   :  { %502 = shalt.err (!%p499_p8)
}
 0x169   :  { %s503_s19 = scalar_lea.hbm %s627_s5, 256 }
 0x16a   :  { %p504_p9 = scmp.ne.s32.totalorder %s627_s5, %s503_s19  ;;  %p507_p10 = scmp.lt.u32.totalorder %s503_s19, %s627_s5 }
 0x16c   :  { %p509_p11 = pnand %p507_p10, %p504_p9 }
 0x16e   :  { %512 = shalt.err (!%p509_p11)
}
 0x16f   :  { %316 = dma.vmem_to_hbm [thread:$0]  %s314_s16, 256, %s627_s5, [#allocation4]  }
 0x170   :  { %519 = dma.done.wait [#allocation4], 256  }
 0x171   :  { %520 = vsyncadd [#allocation4], 4294967040 }
 0x172   :  { %320 = vsyncpa [#allocation3], 1 }
 0x173   :  { %321 = vsyncpa [#allocation6], 1 }
 0x174   :  { %322 = vsyncpa [#allocation9], 1 }
 0x175   :  { %323 = vsyncpa [#allocation4], 1 }

</bundles_post_ra>
